<compile_context>
chip_gen: v5e
topology: v5e:2x2
jax: 0.10.0
libtpu: 0.0.40
codegen_flags: <defaults>
</compile_context>

<pallas_src>
import functools

import jax
import jax.numpy as jnp
from jax.experimental import pallas as pl
from jax.experimental.pallas import tpu as pltpu


def _round_up(n, m):
    return ((n + m - 1) // m) * m


def laplacian_with_self_loop(adj):
    """D^-1/2 (A+I)^T D^-1/2, mirroring GCN.calculate_laplacian_with_self_loop."""
    m = adj + jnp.eye(adj.shape[0], dtype=adj.dtype)
    row_sum = m.sum(axis=1)
    d_inv_sqrt = jnp.power(row_sum, -0.5)
    d_inv_sqrt = jnp.where(jnp.isinf(d_inv_sqrt), 0.0, d_inv_sqrt)
    d = jnp.diag(d_inv_sqrt)
    return (m @ d).T @ d


def gcn_kernel(x_ref, supT_ref, w1_ref, b1_ref, w2_ref, b2_ref, o_ref):
    """
    Transposed math so num_nodes stays on the lane axis everywhere:
        out[b]^T = W2 @ relu( W1 @ (x[b] @ support^T) + b1 ) + b2

    x_ref   : (bb, S_pad, N_pad)  compute dtype  (original (B, seq, nodes) layout)
    supT_ref: (N_pad, N_pad)      compute dtype  (support^T, grid-resident)
    w1_ref  : (H_pad, S_pad)      compute dtype  (linear.weight, PyTorch layout)
    b1_ref  : (H_pad, 1)          float32
    w2_ref  : (S_pad, H_pad)      compute dtype  (fc.weight, PyTorch layout)
    b2_ref  : (S_pad, 1)          float32
    o_ref   : (bb, S_pad, N_pad)  compute dtype
    """
    bb, S_pad, N_pad = x_ref.shape
    H_pad = w1_ref.shape[0]

    supT = supT_ref[...]
    w1 = w1_ref[...]
    w2 = w2_ref[...]
    cdt = supT.dtype

    # Hoisted bias lane-broadcasts (done once per grid step, not per graph).
    b1b = jnp.broadcast_to(b1_ref[...], (H_pad, N_pad))
    b2b = jnp.broadcast_to(b2_ref[...], (S_pad, N_pad))

    # Layer 1 fused over the batch tile: agg_all[b*S:(b+1)*S] = x[b] @ support^T.
    # Collapsing (bb, S_pad) is sublane-aligned (S_pad % 16 == 0) -> free reshape.
    x2d = x_ref[...].reshape(bb * S_pad, N_pad)
    agg_all = jnp.dot(x2d, supT, preferred_element_type=jnp.float32).astype(cdt)

    # Layers 2/3 per graph (their contractions are over S / H, which live
    # per-graph on the sublane axis).  Tiny per-iteration vreg footprint.
    for b in range(bb):
        agg_t = agg_all[b * S_pad:(b + 1) * S_pad, :]                    # (S_pad, N_pad)
        h_t = jnp.dot(w1, agg_t, preferred_element_type=jnp.float32) + b1b
        h_t = jnp.maximum(h_t, 0.0)                                      # f32 elementwise
        y_t = jnp.dot(w2, h_t.astype(cdt), preferred_element_type=jnp.float32) + b2b
        o_ref[b] = y_t.astype(o_ref.dtype)                               # (S_pad, N_pad)


@functools.partial(jax.jit, static_argnames=("block_b", "compute_dtype"))
def gcn_forward(x, adj, w1, b1, w2, b2, *, block_b=4, compute_dtype=jnp.bfloat16):
    """
    x  : (B, seq_len, num_nodes)  -- same layout as the PyTorch module's input
    adj: (num_nodes, num_nodes)
    w1 : (hidden, seq_len) = linear.weight ; b1: (hidden,) = linear.bias
    w2 : (seq_len, hidden) = fc.weight     ; b2: (seq_len,) = fc.bias
    returns (B, seq_len, num_nodes), float32
    """
    B, S, N = x.shape
    H = w1.shape[0]

    # Laplacian normalization of the (constant) adjacency: cheap O(N^2) XLA pre-op.
    support = laplacian_with_self_loop(adj.astype(jnp.float32))
    sup_t = support.T

    N_pad = _round_up(N, 128)   # lane axis -> needs 128 for unmasked stores / full MXU cols
    S_pad = _round_up(S, 16)    # sublane / contraction dims: dtype sublane tile only
    H_pad = _round_up(H, 16)
    bb = max(1, min(block_b, B))

    cdt = jnp.dtype(compute_dtype)
    # Cast BEFORE padding so the wrapper pad pass writes compute-dtype bytes.
    xp = jnp.pad(x.astype(compute_dtype), ((0, 0), (0, S_pad - S), (0, N_pad - N)))
    sp = jnp.pad(sup_t, ((0, N_pad - N), (0, N_pad - N))).astype(compute_dtype)
    w1p = jnp.pad(w1.astype(compute_dtype), ((0, H_pad - H), (0, S_pad - S)))
    w2p = jnp.pad(w2.astype(compute_dtype), ((0, S_pad - S), (0, H_pad - H)))
    b1p = jnp.pad(b1.astype(jnp.float32), (0, H_pad - H)).reshape(H_pad, 1)
    b2p = jnp.pad(b2.astype(jnp.float32), (0, S_pad - S)).reshape(S_pad, 1)

    steps = pl.cdiv(B, bb)
    grid = (steps,)
    const2d = lambda shape: pl.BlockSpec(shape, lambda i: (0, 0))  # grid-resident

    itm = cdt.itemsize
    flops = 2 * steps * bb * N_pad * (S_pad * N_pad + 2 * H_pad * S_pad)
    bytes_accessed = (xp.size * itm + B * S_pad * N_pad * itm
                      + (sp.size + w1p.size + w2p.size) * itm
                      + (b1p.size + b2p.size) * 4)

    out = pl.pallas_call(
        gcn_kernel,
        out_shape=jax.ShapeDtypeStruct((B, S_pad, N_pad), compute_dtype),
        grid_spec=pltpu.PrefetchScalarGridSpec(
            num_scalar_prefetch=0,
            grid=grid,
            in_specs=[
                pl.BlockSpec((bb, S_pad, N_pad), lambda i: (i, 0, 0)),  # x batch tile
                const2d((N_pad, N_pad)),                                # support^T
                const2d((H_pad, S_pad)),                                # W1
                const2d((H_pad, 1)),                                    # b1
                const2d((S_pad, H_pad)),                                # W2
                const2d((S_pad, 1)),                                    # b2
            ],
            out_specs=pl.BlockSpec((bb, S_pad, N_pad), lambda i: (i, 0, 0)),
        ),
        compiler_params=pltpu.CompilerParams(
            dimension_semantics=("parallel",),
            vmem_limit_bytes=48 * 1024 * 1024,
        ),
        cost_estimate=pl.CostEstimate(
            flops=int(flops), transcendentals=0, bytes_accessed=int(bytes_accessed)),
    )(xp, sp, w1p, b1p, w2p, b2p)

    # TODO(synk): for very large graphs (N_pad >= ~2048 on v7x's 64 MiB VMEM) the
    # N_pad^2 support matrix would need single-buffering / a node-tiling grid axis
    # with an f32 accumulator; not needed at these sizes.
    # Padded rows/cols hold W2@relu(b1)+b2 garbage -> always slice before reuse.
    return out[:, :S, :N].astype(jnp.float32)


def reference_gcn(x, adj, w1, b1, w2, b2):
    """Pure-JAX mirror of the PyTorch GCN.forward."""
    support = laplacian_with_self_loop(adj.astype(jnp.float32))
    xp = jnp.transpose(x, (0, 2, 1))                       # (B, N, S)
    agg = jnp.einsum("ij,bjk->bik", support, xp)           # (B, N, S)
    h = jnp.maximum(agg @ w1.T + b1, 0.0)                  # (B, N, H)
    y = h @ w2.T + b2                                      # (B, N, S)
    return jnp.transpose(y, (0, 2, 1))                     # (B, S, N)


if __name__ == "__main__":
    batch, seq_len, num_nodes, hidden = 8, 12, 20, 32

    key = jax.random.PRNGKey(0)
    kx, ka, kw1, kb1, kw2, kb2 = jax.random.split(key, 6)

    x = jax.random.normal(kx, (batch, seq_len, num_nodes), dtype=jnp.float32)
    adj = (jax.random.uniform(ka, (num_nodes, num_nodes)) > 0.5).astype(jnp.float32)
    adj = jnp.maximum(adj, adj.T)  # symmetric 0/1 graph

    def linear_init(k, fan_in, shape):
        bound = 1.0 / (fan_in ** 0.5)
        return jax.random.uniform(k, shape, jnp.float32, -bound, bound)

    w1 = linear_init(kw1, seq_len, (hidden, seq_len))   # linear.weight
    b1 = linear_init(kb1, seq_len, (hidden,))           # linear.bias
    w2 = linear_init(kw2, hidden, (seq_len, hidden))    # fc.weight
    b2 = linear_init(kb2, hidden, (seq_len,))           # fc.bias

    with jax.default_matmul_precision("highest"):
        ref = reference_gcn(x, adj, w1, b1, w2, b2)

    # Exact (f32) path.
    out_f32 = jax.block_until_ready(
        gcn_forward(x, adj, w1, b1, w2, b2, block_b=4, compute_dtype=jnp.float32))
    assert out_f32.shape == (batch, seq_len, num_nodes)
    assert jnp.allclose(out_f32, ref, atol=5e-2, rtol=5e-2), "f32 kernel mismatch"

    # Fast (bf16 MXU, bf16 output store) path.
    out_bf16 = jax.block_until_ready(
        gcn_forward(x, adj, w1, b1, w2, b2, block_b=4, compute_dtype=jnp.bfloat16))
    assert out_bf16.shape == (batch, seq_len, num_nodes)
    assert jnp.allclose(out_bf16, ref, atol=1.5e-1, rtol=1.5e-1), "bf16 kernel mismatch"

    print("KERNEL_OK")
</pallas_src>

<mosaic_0001>
module attributes {stable_mosaic.version = 11 : i64} {
  func.func @gcn_kernel(%arg0: i32, %arg1: memref<4x16x128xf32, #tpu.memory_space<vmem>>, %arg2: memref<128x128xf32, #tpu.memory_space<vmem>>, %arg3: memref<32x16xf32, #tpu.memory_space<vmem>>, %arg4: memref<32x1xf32, #tpu.memory_space<vmem>>, %arg5: memref<16x32xf32, #tpu.memory_space<vmem>>, %arg6: memref<16x1xf32, #tpu.memory_space<vmem>>, %arg7: memref<4x16x128xf32, #tpu.memory_space<vmem>>) attributes {dimension_semantics = [#tpu.dimension_semantics<parallel>], iteration_bounds = array<i64: 2>, scalar_prefetch = 0 : i64, scratch_operands = 0 : i64, tpu.core_type = #tpu.core_type<tc>, window_params = [{transform_indices = @transform_0, window_bounds = array<i64: 4, 16, 128>}, {pipeline_mode = #tpu.pipeline_mode<synchronous>, transform_indices = @transform_1, window_bounds = array<i64: 128, 128>}, {pipeline_mode = #tpu.pipeline_mode<synchronous>, transform_indices = @transform_2, window_bounds = array<i64: 32, 16>}, {pipeline_mode = #tpu.pipeline_mode<synchronous>, transform_indices = @transform_3, window_bounds = array<i64: 32, 1>}, {pipeline_mode = #tpu.pipeline_mode<synchronous>, transform_indices = @transform_4, window_bounds = array<i64: 16, 32>}, {pipeline_mode = #tpu.pipeline_mode<synchronous>, transform_indices = @transform_5, window_bounds = array<i64: 16, 1>}, {transform_indices = @transform_6, window_bounds = array<i64: 4, 16, 128>}]} {
    %c0 = arith.constant 0 : index
    %c0_0 = arith.constant 0 : index
    %0 = vector.load %arg2[%c0, %c0_0] : memref<128x128xf32, #tpu.memory_space<vmem>>, vector<128x128xf32>
    %c0_1 = arith.constant 0 : index
    %c0_2 = arith.constant 0 : index
    %1 = vector.load %arg3[%c0_1, %c0_2] : memref<32x16xf32, #tpu.memory_space<vmem>>, vector<32x16xf32>
    %c0_3 = arith.constant 0 : index
    %c0_4 = arith.constant 0 : index
    %2 = vector.load %arg5[%c0_3, %c0_4] : memref<16x32xf32, #tpu.memory_space<vmem>>, vector<16x32xf32>
    %c0_5 = arith.constant 0 : index
    %c0_6 = arith.constant 0 : index
    %3 = vector.load %arg4[%c0_5, %c0_6] : memref<32x1xf32, #tpu.memory_space<vmem>>, vector<32x1xf32>
    %4 = vector.shape_cast %3 : vector<32x1xf32> to vector<32x1xf32>
    %5 = vector.broadcast %4 : vector<32x1xf32> to vector<32x128xf32>
    %c0_7 = arith.constant 0 : index
    %c0_8 = arith.constant 0 : index
    %6 = vector.load %arg6[%c0_7, %c0_8] : memref<16x1xf32, #tpu.memory_space<vmem>>, vector<16x1xf32>
    %7 = vector.shape_cast %6 : vector<16x1xf32> to vector<16x1xf32>
    %8 = vector.broadcast %7 : vector<16x1xf32> to vector<16x128xf32>
    %c0_9 = arith.constant 0 : index
    %c0_10 = arith.constant 0 : index
    %c0_11 = arith.constant 0 : index
    %9 = vector.load %arg1[%c0_9, %c0_10, %c0_11] : memref<4x16x128xf32, #tpu.memory_space<vmem>>, vector<4x16x128xf32>
    %10 = vector.shape_cast %9 : vector<4x16x128xf32> to vector<64x128xf32>
    %cst = arith.constant dense<0.000000e+00> : vector<64x128xf32>
    %11 = tpu.matmul %10, %0, %cst {dimension_numbers = #tpu.dot_dimension_numbers<[1], [0], [0], [1], [0, 0, 1, 1], [], []>} : vector<64x128xf32>, vector<128x128xf32>, vector<64x128xf32> -> vector<64x128xf32>
    %12 = vector.extract_strided_slice %11 {offsets = [0, 0], sizes = [16, 128], strides = [1, 1]} : vector<64x128xf32> to vector<16x128xf32>
    %cst_12 = arith.constant dense<0.000000e+00> : vector<32x128xf32>
    %13 = tpu.matmul %1, %12, %cst_12 {dimension_numbers = #tpu.dot_dimension_numbers<[1], [0], [0], [1], [0, 0, 1, 1], [], []>} : vector<32x16xf32>, vector<16x128xf32>, vector<32x128xf32> -> vector<32x128xf32>
    %14 = arith.addf %13, %5 : vector<32x128xf32>
    %cst_13 = arith.constant 0.000000e+00 : f32
    %15 = vector.broadcast %cst_13 : f32 to vector<32x128xf32>
    %16 = arith.maximumf %14, %15 : vector<32x128xf32>
    %cst_14 = arith.constant dense<0.000000e+00> : vector<16x128xf32>
    %17 = tpu.matmul %2, %16, %cst_14 {dimension_numbers = #tpu.dot_dimension_numbers<[1], [0], [0], [1], [0, 0, 1, 1], [], []>} : vector<16x32xf32>, vector<32x128xf32>, vector<16x128xf32> -> vector<16x128xf32>
    %18 = arith.addf %17, %8 : vector<16x128xf32>
    %c0_15 = arith.constant 0 : index
    %c0_16 = arith.constant 0 : index
    %c0_17 = arith.constant 0 : index
    %19 = vector.load %arg7[%c0_15, %c0_16, %c0_17] : memref<4x16x128xf32, #tpu.memory_space<vmem>>, vector<1x16x128xf32>
    %20 = vector.shape_cast %19 : vector<1x16x128xf32> to vector<16x128xf32>
    %21 = vector.shape_cast %18 : vector<16x128xf32> to vector<1x16x128xf32>
    tpu.vector_store %arg7[%c0_15, %c0_16, %c0_17], %21 {strides = array<i32>} : memref<4x16x128xf32, #tpu.memory_space<vmem>>, vector<1x16x128xf32>,
    %22 = vector.extract_strided_slice %11 {offsets = [16, 0], sizes = [16, 128], strides = [1, 1]} : vector<64x128xf32> to vector<16x128xf32>
    %cst_18 = arith.constant dense<0.000000e+00> : vector<32x128xf32>
    %23 = tpu.matmul %1, %22, %cst_18 {dimension_numbers = #tpu.dot_dimension_numbers<[1], [0], [0], [1], [0, 0, 1, 1], [], []>} : vector<32x16xf32>, vector<16x128xf32>, vector<32x128xf32> -> vector<32x128xf32>
    %24 = arith.addf %23, %5 : vector<32x128xf32>
    %cst_19 = arith.constant 0.000000e+00 : f32
    %25 = vector.broadcast %cst_19 : f32 to vector<32x128xf32>
    %26 = arith.maximumf %24, %25 : vector<32x128xf32>
    %cst_20 = arith.constant dense<0.000000e+00> : vector<16x128xf32>
    %27 = tpu.matmul %2, %26, %cst_20 {dimension_numbers = #tpu.dot_dimension_numbers<[1], [0], [0], [1], [0, 0, 1, 1], [], []>} : vector<16x32xf32>, vector<32x128xf32>, vector<16x128xf32> -> vector<16x128xf32>
    %28 = arith.addf %27, %8 : vector<16x128xf32>
    %c1 = arith.constant 1 : index
    %c0_21 = arith.constant 0 : index
    %c0_22 = arith.constant 0 : index
    %29 = vector.load %arg7[%c1, %c0_21, %c0_22] : memref<4x16x128xf32, #tpu.memory_space<vmem>>, vector<1x16x128xf32>
    %30 = vector.shape_cast %29 : vector<1x16x128xf32> to vector<16x128xf32>
    %31 = vector.shape_cast %28 : vector<16x128xf32> to vector<1x16x128xf32>
    tpu.vector_store %arg7[%c1, %c0_21, %c0_22], %31 {strides = array<i32>} : memref<4x16x128xf32, #tpu.memory_space<vmem>>, vector<1x16x128xf32>,
    %32 = vector.extract_strided_slice %11 {offsets = [32, 0], sizes = [16, 128], strides = [1, 1]} : vector<64x128xf32> to vector<16x128xf32>
    %cst_23 = arith.constant dense<0.000000e+00> : vector<32x128xf32>
    %33 = tpu.matmul %1, %32, %cst_23 {dimension_numbers = #tpu.dot_dimension_numbers<[1], [0], [0], [1], [0, 0, 1, 1], [], []>} : vector<32x16xf32>, vector<16x128xf32>, vector<32x128xf32> -> vector<32x128xf32>
    %34 = arith.addf %33, %5 : vector<32x128xf32>
    %cst_24 = arith.constant 0.000000e+00 : f32
    %35 = vector.broadcast %cst_24 : f32 to vector<32x128xf32>
    %36 = arith.maximumf %34, %35 : vector<32x128xf32>
    %cst_25 = arith.constant dense<0.000000e+00> : vector<16x128xf32>
    %37 = tpu.matmul %2, %36, %cst_25 {dimension_numbers = #tpu.dot_dimension_numbers<[1], [0], [0], [1], [0, 0, 1, 1], [], []>} : vector<16x32xf32>, vector<32x128xf32>, vector<16x128xf32> -> vector<16x128xf32>
    %38 = arith.addf %37, %8 : vector<16x128xf32>
    %c2 = arith.constant 2 : index
    %c0_26 = arith.constant 0 : index
    %c0_27 = arith.constant 0 : index
    %39 = vector.load %arg7[%c2, %c0_26, %c0_27] : memref<4x16x128xf32, #tpu.memory_space<vmem>>, vector<1x16x128xf32>
    %40 = vector.shape_cast %39 : vector<1x16x128xf32> to vector<16x128xf32>
    %41 = vector.shape_cast %38 : vector<16x128xf32> to vector<1x16x128xf32>
    tpu.vector_store %arg7[%c2, %c0_26, %c0_27], %41 {strides = array<i32>} : memref<4x16x128xf32, #tpu.memory_space<vmem>>, vector<1x16x128xf32>,
    %42 = vector.extract_strided_slice %11 {offsets = [48, 0], sizes = [16, 128], strides = [1, 1]} : vector<64x128xf32> to vector<16x128xf32>
    %cst_28 = arith.constant dense<0.000000e+00> : vector<32x128xf32>
    %43 = tpu.matmul %1, %42, %cst_28 {dimension_numbers = #tpu.dot_dimension_numbers<[1], [0], [0], [1], [0, 0, 1, 1], [], []>} : vector<32x16xf32>, vector<16x128xf32>, vector<32x128xf32> -> vector<32x128xf32>
    %44 = arith.addf %43, %5 : vector<32x128xf32>
    %cst_29 = arith.constant 0.000000e+00 : f32
    %45 = vector.broadcast %cst_29 : f32 to vector<32x128xf32>
    %46 = arith.maximumf %44, %45 : vector<32x128xf32>
    %cst_30 = arith.constant dense<0.000000e+00> : vector<16x128xf32>
    %47 = tpu.matmul %2, %46, %cst_30 {dimension_numbers = #tpu.dot_dimension_numbers<[1], [0], [0], [1], [0, 0, 1, 1], [], []>} : vector<16x32xf32>, vector<32x128xf32>, vector<16x128xf32> -> vector<16x128xf32>
    %48 = arith.addf %47, %8 : vector<16x128xf32>
    %c3 = arith.constant 3 : index
    %c0_31 = arith.constant 0 : index
    %c0_32 = arith.constant 0 : index
    %49 = vector.load %arg7[%c3, %c0_31, %c0_32] : memref<4x16x128xf32, #tpu.memory_space<vmem>>, vector<1x16x128xf32>
    %50 = vector.shape_cast %49 : vector<1x16x128xf32> to vector<16x128xf32>
    %51 = vector.shape_cast %48 : vector<16x128xf32> to vector<1x16x128xf32>
    tpu.vector_store %arg7[%c3, %c0_31, %c0_32], %51 {strides = array<i32>} : memref<4x16x128xf32, #tpu.memory_space<vmem>>, vector<1x16x128xf32>,
    return
  }
  func.func @transform_0(%arg0: i32) -> (i32, i32, i32) {
    %c0_i32 = arith.constant 0 : i32
    %c0_i32_0 = arith.constant 0 : i32
    %c0_i32_1 = arith.constant 0 : i32
    return %arg0, %c0_i32, %c0_i32_0 : i32, i32, i32
  }
  func.func @transform_1(%arg0: i32) -> (i32, i32) {
    %c0_i32 = arith.constant 0 : i32
    %c0_i32_0 = arith.constant 0 : i32
    %c0_i32_1 = arith.constant 0 : i32
    return %c0_i32, %c0_i32_0 : i32, i32
  }
  func.func @transform_2(%arg0: i32) -> (i32, i32) {
    %c0_i32 = arith.constant 0 : i32
    %c0_i32_0 = arith.constant 0 : i32
    %c0_i32_1 = arith.constant 0 : i32
    return %c0_i32, %c0_i32_0 : i32, i32
  }
  func.func @transform_3(%arg0: i32) -> (i32, i32) {
    %c0_i32 = arith.constant 0 : i32
    %c0_i32_0 = arith.constant 0 : i32
    %c0_i32_1 = arith.constant 0 : i32
    return %c0_i32, %c0_i32_0 : i32, i32
  }
  func.func @transform_4(%arg0: i32) -> (i32, i32) {
    %c0_i32 = arith.constant 0 : i32
    %c0_i32_0 = arith.constant 0 : i32
    %c0_i32_1 = arith.constant 0 : i32
    return %c0_i32, %c0_i32_0 : i32, i32
  }
  func.func @transform_5(%arg0: i32) -> (i32, i32) {
    %c0_i32 = arith.constant 0 : i32
    %c0_i32_0 = arith.constant 0 : i32
    %c0_i32_1 = arith.constant 0 : i32
    return %c0_i32, %c0_i32_0 : i32, i32
  }
  func.func @transform_6(%arg0: i32) -> (i32, i32, i32) {
    %c0_i32 = arith.constant 0 : i32
    %c0_i32_0 = arith.constant 0 : i32
    %c0_i32_1 = arith.constant 0 : i32
    return %arg0, %c0_i32, %c0_i32_0 : i32, i32, i32
  }
}

</mosaic_0001>

<bundles_post_ra>
// kernel: gcn_forward.1
= control target key start
LH: loop header
LB: loop body
LE: loop exit
PB: predicated region body
PF: predicated region fallthrough
CT: control target
= control target key end

     0   :  { %s781_s21 = smov 0   ;;  %s993_s0 = inlined_call_operand.vmem [shape: f32[8,16,128], index: 0, kind: input, shape index: {}]   ;;  %s994_s1 = inlined_call_operand.vmem [shape: f32[128,128], index: 1, kind: input, shape index: {}]   ;;  %s995_s2 = inlined_call_operand.vmem [shape: f32[32,16], index: 2, kind: input, shape index: {}]   ;;  %s996_s3 = inlined_call_operand.vmem [shape: f32[32,1], index: 3, kind: input, shape index: {}]   ;;  %s997_s4 = inlined_call_operand.vmem [shape: f32[16,32], index: 4, kind: input, shape index: {}]   ;;  %s998_s5 = inlined_call_operand.vmem [shape: f32[16,1], index: 5, kind: input, shape index: {}]   ;;  %s999_s6 = inlined_call_operand.vmem [shape: f32[8,16,128], index: 6, kind: output, shape index: {}]  }
   0x1 LB: > { %s680_s22 = sadd.s32 4294967295, %s743_s21   ;;  %p684_p0 = scmp.ge.s32.totalorder %s743_s21, 1  ;;  %s743_s21 = sphi %s781_s21, %s16_s21  }
   0x2   : > { %p214_p1 = scmp.lt.s32.totalorder %s743_s21, 3 }
   0x4   : > { %p215_p2 = pnand %p684_p0, %p214_p1 }
   0x5   : > { %s685_s15 = sshll.u32 (!%p215_p2), %s680_s22, 2 }
   0x6   : > { %218 = sbr.rel (%p215_p2) target bundleno = 689 (0x2b1), region = 44  ;;  %p247_p3 = scmp.lt.s32.totalorder (!%p215_p2), %s685_s15, 7 }
   0xb   : > { %v275_v0 = vld [vmem:[%s994_s1 + $0x78] sm:$0xff]  ;;  %v274_v1 = vld [vmem:[%s994_s1 + $0x70] sm:$0xff]  ;;  %v273_v2 = vld [vmem:[%s994_s1 + $0x68] sm:$0xff]  ;;  %s1001_s15 = smov (!%p247_p3, %s685_s15), 7  ;;  %v745_v22 = vmov 0   ;;  %vm367_vm0 = vcmask 130048  }
   0xc   : > { %326 = vmatpush.msra.mxu0 %v275_v0  ;;  %v272_v3 = vld [vmem:[%s994_s1 + $0x60] sm:$0xff]  ;;  %v271_v4 = vld [vmem:[%s994_s1 + $0x58] sm:$0xff]  ;;  %v270_v5 = vld [vmem:[%s994_s1 + $0x50] sm:$0xff]  ;;  %s723_s27 = sshll.u32 %s1001_s15, 4  ;;  %735 = vset.pattern.permute.xlu1 %v745_v22  ;;  %vm413_vm1 = vcmask 261120  }
   0xd   : > { %v269_v6 = vld [vmem:[%s994_s1 + $0x48] sm:$0xff]  ;;  %v268_v7 = vld [vmem:[%s994_s1 + $0x40] sm:$0xff]  ;;  %v267_v8 = vld [vmem:[%s994_s1 + $0x38] sm:$0xff]  ;;  %s842_s10 = scalar_lea.vmem %s993_s0, %s723_s27  ;;  %734 = vset.pattern.permute.xlu0 %v745_v22  ;;  %736 = vset.pattern.permute.xlu2 %v745_v22  ;;  %s972_s19 = scalar_lea.vmem %s999_s6, %s723_s27 }
   0xe   : > { %327 = vmatpush.msra.mxu0 %v274_v1  ;;  %v266_v9 = vld [vmem:[%s994_s1 + $0x30] sm:$0xff]  ;;  %v265_v10 = vld [vmem:[%s994_s1 + $0x28] sm:$0xff]  ;;  %v264_v11 = vld [vmem:[%s994_s1 + $0x20] sm:$0xff] }
   0xf   : > { %v263_v12 = vld [vmem:[%s994_s1 + $0x18] sm:$0xff]  ;;  %v262_v13 = vld [vmem:[%s994_s1 + $0x10] sm:$0xff]  ;;  %v261_v14 = vld [vmem:[%s994_s1 + $0x8] sm:$0xff] }
  0x10   : > { %328 = vmatpush.msra.mxu0 %v273_v2  ;;  %v260_v15 = vld [vmem:[%s994_s1] sm:$0xff]  ;;  %v319_v17 = vld [vmem:[%s842_s10 + $0x8] sm:$0xff]  ;;  %v320_v18 = vld [vmem:[%s842_s10 + $0x10] sm:$0xff] }
  0x11   : > { %v318_v16 = vld [vmem:[%s842_s10] sm:$0xff]  ;;  %v321_v19 = vld [vmem:[%s842_s10 + $0x18] sm:$0xff]  ;;  %v323_v21 = vld [vmem:[%s842_s10 + $0x28] sm:$0xff] }
  0x12   : > { %329 = vmatpush.msra.mxu0 %v272_v3  ;;  %v322_v20 = vld [vmem:[%s842_s10 + $0x20] sm:$0xff]  ;;  %v283_v23 = vld [vmem:[%s996_s3 + $0x8] sm:$0xff]  ;;  %v285_v26 = vld [vmem:[%s996_s3 + $0x18] sm:$0xff] }
  0x13   : > { %293 = vperm.xlu1 %735, %v283_v23   ;;  %v282_v24 = vld [vmem:[%s996_s3] sm:$0xff]  ;;  %303 = vperm.xlu0 %734, %v285_v26   ;;  %v284_v29 = vld [vmem:[%s996_s3 + $0x10] sm:$0xff]  ;;  %v875_v31 = vld [vmem:[%s995_s2 + $0x8] sm:$0xff] }
  0x14   : > { %330 = vmatpush.msra.mxu0 %v271_v4  ;;  %v865_v28 = vld [vmem:[%s995_s2] sm:$0xff]  ;;  %v882_v33 = vld [vmem:[%s995_s2 + $0x10] sm:$0xff]  ;;  %v892_v36 = vld [vmem:[%s995_s2 + $0x18] sm:$0xff] }
  0x15   : > { %v324_v34 = vld [vmem:[%s842_s10 + $0x30] sm:$0xff]  ;;  %v325_v37 = vld [vmem:[%s842_s10 + $0x38] sm:$0xff]  ;;  %v926_v58 = vld [vmem:[%s997_s4] sm:$0xff] }
  0x16   : > { %331 = vmatpush.msra.mxu0 %v270_v5  ;;  %v933_v61 = vld [vmem:[%s997_s4 + $0x8] sm:$0xff]  ;;  %v306_v5 = vld [vmem:[%s998_s5] sm:$0xff] }
  0x17   : > { %310 = vperm.xlu2 %736, %v306_v5  }
  0x18   : > { %332 = vmatpush.msra.mxu0 %v269_v6 }
  0x1a   : > { %333 = vmatpush.msra.mxu0 %v268_v7 }
  0x1b   : > { %288 = vperm.xlu1 %735, %v282_v24   ;;  %298 = vperm.xlu0 %734, %v284_v29  }
  0x1c   : > { %334 = vmatpush.msra.mxu0 %v267_v8 }
  0x1e   : > { %335 = vmatpush.msra.mxu0 %v266_v9 }
  0x20   : > { %336 = vmatpush.msra.mxu0 %v265_v10 }
  0x22   : > { %337 = vmatpush.msra.mxu0 %v264_v11 }
  0x24   : > { %338 = vmatpush.msra.mxu0 %v263_v12 }
  0x26   : > { %339 = vmatpush.msra.mxu0 %v262_v13 }
  0x28   : > { %340 = vmatpush.msra.mxu0 %v261_v14  ;;  %v307_v14 = vld [vmem:[%s998_s5 + $0x8] sm:$0xff] }
  0x29   : > { %315 = vperm.xlu2 %736, %v307_v14  }
  0x2a   : > { %341 = vmatpush.msra.mxu0 %v260_v15 }
  0x2b   : > { %342 = vmatmul.f32.vlgmr.msra.gmra.mxu0 %v318_v16 }
  0x33   : > { %345 = vmatmul.f32.gmra.mxu0 %v319_v17 }
  0x3b   : > { %348 = vmatmul.f32.gmra.mxu0 %v320_v18 }
  0x43   : > { %351 = vmatmul.f32.gmra.mxu0 %v321_v19 }
  0x4b   : > { %354 = vmatmul.f32.gmra.mxu0 %v322_v20 }
  0x53   : > { %357 = vmatmul.f32.gmra.mxu0 %v323_v21 }
  0x5b   : > { %360 = vmatmul.f32.gmra.mxu0 %v324_v34 }
  0x63   : > { %363 = vmatmul.f32.gmra.mxu0 %v325_v37 }
  0x71   : > { %v311_v21 = vpop.permute.xlu2 %310 }
  0x83   : > { %v316_v24 = vpop.permute.xlu2 %315 }
  0x85   : > { %v911_v41 = vpop.permute.xlu0 %303  ;;  %v913_v42 = vpop.permute.xlu1 %293 }
  0x8d   : > { %v915_v44 = vpop.permute.xlu0 %298  ;;  %v919_v49 = vpop.permute.xlu1 %288 }
  0xa8   : > { %v343_v25 = vpop.f32.mrf.mxu0 }
  0xb0   : > { %v346_v27 = vpop.f32.mrf.mxu0 }
  0xb1   : > { %394 = vmatpush.msra.mxu1 %v346_v27 }
  0xb3   : > { %395 = vmatpush.msra.mxu1 %v343_v25 }
  0xb4   : > { %691 = vmatmul.msk.f32.vlgmr.msra.gmra.mxu1 %vm367_vm0, %v865_v28 }
  0xb8   : > { %v349_v30 = vpop.f32.mrf.mxu0 }
  0xbc   : > { %692 = vmatmul.msk.f32.gmra.mxu1 %vm367_vm0, %v875_v31 }
  0xc0   : > { %v352_v32 = vpop.f32.mrf.mxu0 }
  0xc1   : > { %459 = vmatpush.msra.mxu3 %v352_v32 }
  0xc3   : > { %460 = vmatpush.msra.mxu3 %v349_v30 }
  0xc4   : > { %693 = vmatmul.msk.f32.gmra.mxu1 %vm367_vm0, %v882_v33  ;;  %697 = vmatmul.msk.f32.vlgmr.msra.gmra.mxu3 %vm367_vm0, %v865_v28 }
  0xc8   : > { %v355_v35 = vpop.f32.mrf.mxu0 }
  0xcc   : > { %694 = vmatmul.msk.f32.gmra.mxu1 %vm367_vm0, %v892_v36  ;;  %698 = vmatmul.msk.f32.gmra.mxu3 %vm367_vm0, %v875_v31 }
  0xd0   : > { %v358_v38 = vpop.f32.mrf.mxu0 }
  0xd1   : > { %518 = vmatpush.msrb.mxu1 %v358_v38 }
  0xd3   : > { %519 = vmatpush.msrb.mxu1 %v355_v35 }
  0xd4   : > { %699 = vmatmul.msk.f32.gmra.mxu3 %vm367_vm0, %v882_v33  ;;  %705 = vmatmul.msk.f32.vlgmr.msrb.gmra.mxu1 %vm367_vm0, %v865_v28 }
  0xd8   : > { %v361_v63 = vpop.f32.mrf.mxu0 }
  0xdc   : > { %700 = vmatmul.msk.f32.gmra.mxu3 %vm367_vm0, %v892_v36  ;;  %706 = vmatmul.msk.f32.gmra.mxu1 %vm367_vm0, %v875_v31 }
  0xe0   : > { %v364_v11 = vpop.f32.mrf.mxu0 }
  0xe4   : > { %707 = vmatmul.msk.f32.gmra.mxu1 %vm367_vm0, %v882_v33 }
  0xec   : > { %708 = vmatmul.msk.f32.gmra.mxu1 %vm367_vm0, %v892_v36 }
 0x131   : > { %v397_v39 = vpop.f32.mrf.mxu1 }
 0x132   : > { %v398_v53 = vadd.f32 %v397_v39, %v919_v49 }
 0x134   : > { %v409_v57 = vmax.f32 %v398_v53, 0.0 }
 0x139   : > { %v400_v40 = vpop.f32.mrf.mxu1 }
 0x13a   : > { %v401_v50 = vadd.f32 %v400_v40, %v913_v42 }
 0x13c   : > { %v410_v55 = vmax.f32 %v401_v50, 0.0 }
 0x141   : > { %v403_v43 = vpop.f32.mrf.mxu1 }
 0x142   : > { %v404_v48 = vadd.f32 %v403_v43, %v915_v44 }
 0x144   : > { %v411_v52 = vmax.f32 %v404_v48, 0.0 }
 0x147   : > { %v462_v45 = vpop.f32.mrf.mxu3 }
 0x148   : > { %v463_v6 = vadd.f32 %v462_v45, %v919_v49 }
 0x149   : > { %v406_v46 = vpop.f32.mrf.mxu1 }
 0x14a   : > { %v407_v47 = vadd.f32 %v406_v46, %v911_v41  ;;  %v474_v9 = vmax.f32 %v463_v6, 0.0 }
 0x14c   : > { %v412_v51 = vmax.f32 %v407_v47, 0.0 }
 0x14e   : > { %432 = vmatpush.msra.mxu2 %v412_v51 }
 0x14f   : > { %v465_v54 = vpop.f32.mrf.mxu3 }
 0x150   : > { %433 = vmatpush.msra.mxu2 %v411_v52  ;;  %v466_v3 = vadd.f32 %v465_v54, %v913_v42 }
 0x151   : > { %v521_v56 = vpop.f32.mrf.mxu1 }
 0x152   : > { %434 = vmatpush.msra.mxu2 %v410_v55  ;;  %v475_v8 = vmax.f32 %v466_v3, 0.0  ;;  %v522_v17 = vadd.f32 %v521_v56, %v919_v49 }
 0x154   : > { %435 = vmatpush.msra.mxu2 %v409_v57  ;;  %v533_v20 = vmax.f32 %v522_v17, 0.0 }
 0x155   : > { %695 = vmatmul.msk.f32.vlgmr.msra.gmra.mxu2 %vm413_vm1, %v926_v58 }
 0x157   : > { %v468_v59 = vpop.f32.mrf.mxu3 }
 0x158   : > { %v469_v0 = vadd.f32 %v468_v59, %v915_v44 }
 0x159   : > { %v524_v60 = vpop.f32.mrf.mxu1 }
 0x15a   : > { %v476_v7 = vmax.f32 %v469_v0, 0.0  ;;  %v525_v15 = vadd.f32 %v524_v60, %v913_v42 }
 0x15c   : > { %v534_v19 = vmax.f32 %v525_v15, 0.0 }
 0x15d   : > { %696 = vmatmul.msk.f32.gmra.mxu2 %vm413_vm1, %v933_v61 }
 0x15f   : > { %v471_v62 = vpop.f32.mrf.mxu3 }
 0x160   : > { %v472_v1 = vadd.f32 %v471_v62, %v911_v41 }
 0x161   : > { %v527_v2 = vpop.f32.mrf.mxu1 }
 0x162   : > { %v477_v4 = vmax.f32 %v472_v1, 0.0  ;;  %v528_v12 = vadd.f32 %v527_v2, %v915_v44 }
 0x164   : > { %490 = vmatpush.msrb.mxu2 %v477_v4  ;;  %v535_v18 = vmax.f32 %v528_v12, 0.0 }
 0x166   : > { %491 = vmatpush.msrb.mxu2 %v476_v7 }
 0x168   : > { %492 = vmatpush.msrb.mxu2 %v475_v8 }
 0x169   : > { %v530_v10 = vpop.f32.mrf.mxu1 }
 0x16a   : > { %v531_v13 = vadd.f32 %v530_v10, %v911_v41  ;;  %493 = vmatpush.msrb.mxu2 %v474_v9 }
 0x16b   : > { %701 = vmatmul.msk.f32.vlgmr.msrb.gmra.mxu2 %vm413_vm1, %v926_v58 }
 0x16c   : > { %v536_v16 = vmax.f32 %v531_v13, 0.0  ;;  %577 = vmatpush.msra.mxu2 %v364_v11 }
 0x16e   : > { %578 = vmatpush.msra.mxu2 %v361_v63  ;;  %549 = vmatpush.msrb.mxu3 %v536_v16 }
 0x170   : > { %550 = vmatpush.msrb.mxu3 %v535_v18 }
 0x172   : > { %551 = vmatpush.msrb.mxu3 %v534_v19 }
 0x173   : > { %702 = vmatmul.msk.f32.gmra.mxu2 %vm413_vm1, %v933_v61 }
 0x174   : > { %552 = vmatpush.msrb.mxu3 %v533_v20 }
 0x175   : > { %709 = vmatmul.msk.f32.vlgmr.msrb.gmra.mxu3 %vm413_vm1, %v926_v58 }
 0x17b   : > { %713 = vmatmul.msk.f32.vlgmr.msra.gmra.mxu2 %vm367_vm0, %v865_v28 }
 0x17d   : > { %710 = vmatmul.msk.f32.gmra.mxu3 %vm413_vm1, %v933_v61 }
 0x183   : > { %714 = vmatmul.msk.f32.gmra.mxu2 %vm367_vm0, %v875_v31 }
 0x18b   : > { %715 = vmatmul.msk.f32.gmra.mxu2 %vm367_vm0, %v882_v33 }
 0x193   : > { %716 = vmatmul.msk.f32.gmra.mxu2 %vm367_vm0, %v892_v36 }
 0x1d8   : > { %v437_v22 = vpop.f32.mrf.mxu2 }
 0x1d9   : > { %v438_v23 = vadd.f32 %v437_v22, %v311_v21 }
 0x1db   : > { %443 = vst [vmem:[%s972_s19] sm:$0xff] %v438_v23 }
 0x1e0   : > { %v440_v25 = vpop.f32.mrf.mxu2 }
 0x1e1   : > { %v441_v26 = vadd.f32 %v440_v25, %v316_v24 }
 0x1e3   : > { %444 = vst [vmem:[%s972_s19 + $0x8] sm:$0xff] %v441_v26 }
 0x1ee   : > { %v495_v27 = vpop.f32.mrf.mxu2 }
 0x1ef   : > { %v496_v28 = vadd.f32 %v495_v27, %v311_v21 }
 0x1f1   : > { %703 = vst [vmem:[%s972_s19 + $0x10] sm:$0xff] %v496_v28 }
 0x1f6   : > { %v498_v29 = vpop.f32.mrf.mxu2 }
 0x1f7   : > { %v499_v30 = vadd.f32 %v498_v29, %v316_v24 }
 0x1f8   : > { %v554_v33 = vpop.f32.mrf.mxu3 }
 0x1f9   : > { %704 = vst [vmem:[%s972_s19 + $0x18] sm:$0xff] %v499_v30  ;;  %v555_v34 = vadd.f32 %v554_v33, %v311_v21 }
 0x1fb   : > { %711 = vst [vmem:[%s972_s19 + $0x20] sm:$0xff] %v555_v34 }
 0x1fe   : > { %v580_v31 = vpop.f32.mrf.mxu2 }
 0x1ff   : > { %v581_v46 = vadd.f32 %v580_v31, %v919_v49 }
 0x200   : > { %v557_v36 = vpop.f32.mrf.mxu3 }
 0x201   : > { %v558_v37 = vadd.f32 %v557_v36, %v316_v24  ;;  %v592_v50 = vmax.f32 %v581_v46, 0.0 }
 0x203   : > { %712 = vst [vmem:[%s972_s19 + $0x28] sm:$0xff] %v558_v37 }
 0x206   : > { %v583_v32 = vpop.f32.mrf.mxu2 }
 0x207   : > { %v584_v43 = vadd.f32 %v583_v32, %v913_v42 }
 0x209   : > { %v593_v48 = vmax.f32 %v584_v43, 0.0 }
 0x20e   : > { %v586_v35 = vpop.f32.mrf.mxu2 }
 0x20f   : > { %v587_v39 = vadd.f32 %v586_v35, %v915_v44 }
 0x211   : > { %v594_v47 = vmax.f32 %v587_v39, 0.0 }
 0x216   : > { %v589_v38 = vpop.f32.mrf.mxu2 }
 0x217   : > { %v590_v40 = vadd.f32 %v589_v38, %v911_v41 }
 0x219   : > { %v595_v45 = vmax.f32 %v590_v40, 0.0 }
 0x21b   : > { %608 = vmatpush.msra.mxu3 %v595_v45 }
 0x21d   : > { %609 = vmatpush.msra.mxu3 %v594_v47 }
 0x21f   : > { %610 = vmatpush.msra.mxu3 %v593_v48 }
 0x221   : > { %611 = vmatpush.msra.mxu3 %v592_v50 }
 0x222   : > { %717 = vmatmul.msk.f32.vlgmr.msra.gmra.mxu3 %vm413_vm1, %v926_v58 }
 0x22a   : > { %718 = vmatmul.msk.f32.gmra.mxu3 %vm413_vm1, %v933_v61 }
 0x2a5   : > { %v613_v41 = vpop.f32.mrf.mxu3 }
 0x2a6   : > { %v614_v44 = vadd.f32 %v613_v41, %v311_v21 }
 0x2a8   : > { %719 = vst [vmem:[%s972_s19 + $0x30] sm:$0xff] %v614_v44 }
 0x2ad   : > { %v616_v42 = vpop.f32.mrf.mxu3 }
 0x2ae   : > { %v617_v51 = vadd.f32 %v616_v42, %v316_v24 }
 0x2b0   : > { %720 = vst [vmem:[%s972_s19 + $0x38] sm:$0xff] %v617_v51 }
 0x2b1 PF: > { %s16_s21 = sadd.s32 1, %s743_s21  }
 0x2b2   : > { %p13_p4 = scmp.ge.s32.totalorder %s16_s21, 4  }
 0x2b4   :  { %15 = sbr.rel (!%p13_p4) target bundleno = 1 (0x1), region = 77 }

</bundles_post_ra>
